<compile_context>
chip_gen: v5e
topology: v5e:2x2
jax: 0.10.0
libtpu: 0.0.40
codegen_flags: <defaults>
</compile_context>

<pallas_src>
import functools

import jax
import jax.numpy as jnp
from jax.experimental import pallas as pl
from jax.experimental.pallas import tpu as pltpu

# -----------------------------------------------------------------------------
# Config (synthetic "args" from the PyTorch module)
# -----------------------------------------------------------------------------
INPUT_SIZE = 16
HIDDEN_SIZE = 32
OUTPUT_SIZE = 4
NUM_HIDDEN_LAYERS = 3
BATCH = 8
BN_EPS = 1e-5
LANES = 128  # pad every feature dimension to the vreg lane width


# -----------------------------------------------------------------------------
# Kernel
# -----------------------------------------------------------------------------
def _bn_fused(x, gamma, beta):
    """Training-mode BatchNorm1d with the affine folded into one FMA.

    x: (B, 128), gamma/beta: (1, 128).  Zero-padded columns stay zero because
    gamma/beta are zero there.
    """
    mean = jnp.mean(x, axis=0, keepdims=True)      # XLU sublane reduce
    centered = x - mean
    var = jnp.mean(centered * centered, axis=0, keepdims=True)
    inv_std = jax.lax.rsqrt(var + BN_EPS)          # EUP slot (free vs VALU)
    scale = inv_std * gamma                        # (1, 128) row ops
    shift = beta - mean * scale                    # (1, 128)
    return x * scale + shift                       # single full-vreg FMA


def _mlp_kernel(num_hidden_layers, x_ref, w_ref, v_ref, out_ref):
    # x_ref : (B, 128)                 input, padded to 128 lanes
    # w_ref : ((nh+1)*128, 128)        weight slab, one padded 128x128 per layer
    # v_ref : (Vrows, 128)             vector slab:
    #           row 0: input_bn gamma,  row 1: input_bn beta
    #           rows 2+2l, 3+2l       : hidden-layer l (gamma, beta)
    #           row 2+2*nh            : output bias
    #         (hidden Linear biases are omitted: cancelled exactly by BN.)
    # out_ref: (B, 128)                lane-dense output (cols 0..3 valid)
    x = x_ref[...]

    x = _bn_fused(x, v_ref[0:1, :], v_ref[1:2, :])

    for l in range(num_hidden_layers):
        w = w_ref[l * LANES:(l + 1) * LANES, :]
        r = 2 + 2 * l
        g = v_ref[r:r + 1, :]
        be = v_ref[r + 1:r + 2, :]
        # Linear bias intentionally skipped: BN(xW + b) == BN(xW) exactly.
        x = jnp.dot(x, w, preferred_element_type=jnp.float32)
        x = _bn_fused(x, g, be)
        x = jnp.maximum(x, 0.0)  # relu (padded columns remain 0)

    wo = w_ref[num_hidden_layers * LANES:(num_hidden_layers + 1) * LANES, :]
    bo_row = 2 + 2 * num_hidden_layers
    bo = v_ref[bo_row:bo_row + 1, :]
    out_ref[...] = (jnp.dot(x, wo, preferred_element_type=jnp.float32) + bo
                    ).astype(out_ref.dtype)


# -----------------------------------------------------------------------------
# Parameter packing (host-side layout plumbing, done once)
# -----------------------------------------------------------------------------
def pack_params(params):
    n_hidden = len(params["hidden"])
    n_mats = n_hidden + 1

    # Weight slab: each matrix zero-padded into its own 128x128 block.
    wslab = jnp.zeros((n_mats * LANES, LANES), jnp.float32)
    mats = [w for (w, _, _, _) in params["hidden"]] + [params["output"][0]]
    for i, w in enumerate(mats):
        wslab = wslab.at[i * LANES:i * LANES + w.shape[0], :w.shape[1]].set(w)

    # Vector slab: one 128-lane row per gamma / beta / output bias, zero-padded.
    n_vec = 2 + 2 * n_hidden + 1
    v_rows = ((n_vec + 7) // 8) * 8  # round up to a sublane multiple
    vslab = jnp.zeros((v_rows, LANES), jnp.float32)

    def put(slab, row, vec):
        vec = jnp.asarray(vec).reshape(-1)
        return slab.at[row, :vec.shape[0]].set(vec)

    vslab = put(vslab, 0, params["input_bn"][0])
    vslab = put(vslab, 1, params["input_bn"][1])
    for l, (_, _b, g, beta) in enumerate(params["hidden"]):
        r = 2 + 2 * l
        vslab = put(vslab, r, g)
        vslab = put(vslab, r + 1, beta)
    vslab = put(vslab, 2 + 2 * n_hidden, params["output"][1])

    return wslab, vslab


def network_forward(x, params):
    """params: dict with 'input_bn', 'hidden' (list of (W,b,g,beta)), 'output'."""
    n_hidden = len(params["hidden"])
    wslab, vslab = pack_params(params)

    batch, in_f = x.shape
    x_pad = jnp.zeros((batch, LANES), jnp.float32).at[:, :in_f].set(x)

    vmem = pl.BlockSpec(memory_space=pltpu.MemorySpace.VMEM)
    kernel = functools.partial(_mlp_kernel, n_hidden)

    out_pad = pl.pallas_call(
        kernel,
        out_shape=jax.ShapeDtypeStruct((batch, LANES), jnp.float32),
        in_specs=[vmem, vmem, vmem],
        out_specs=vmem,
    )(x_pad, wslab, vslab)

    # Lane-dense store inside the kernel; slice the 4 logical columns here.
    return out_pad[:, :OUTPUT_SIZE]


# -----------------------------------------------------------------------------
# Deterministic parameter init (mirrors the nn.Module's shapes / default init)
# -----------------------------------------------------------------------------
def init_params(key):
    params = {}
    params["input_bn"] = (
        jnp.ones((1, INPUT_SIZE), jnp.float32),
        jnp.zeros((1, INPUT_SIZE), jnp.float32),
    )
    hidden = []
    in_f = INPUT_SIZE
    for _ in range(NUM_HIDDEN_LAYERS):
        key, kw, kb = jax.random.split(key, 3)
        bound = 1.0 / jnp.sqrt(in_f)
        w = jax.random.uniform(kw, (in_f, HIDDEN_SIZE), jnp.float32, -bound, bound)
        b = jax.random.uniform(kb, (1, HIDDEN_SIZE), jnp.float32, -bound, bound)
        g = jnp.ones((1, HIDDEN_SIZE), jnp.float32)
        beta = jnp.zeros((1, HIDDEN_SIZE), jnp.float32)
        hidden.append((w, b, g, beta))
        in_f = HIDDEN_SIZE
    params["hidden"] = hidden

    key, kw, kb = jax.random.split(key, 3)
    bound = 1.0 / jnp.sqrt(HIDDEN_SIZE)
    wo = jax.random.uniform(kw, (HIDDEN_SIZE, OUTPUT_SIZE), jnp.float32, -bound, bound)
    bo = jax.random.uniform(kb, (1, OUTPUT_SIZE), jnp.float32, -bound, bound)
    params["output"] = (wo, bo)
    return params


# -----------------------------------------------------------------------------
# Pure-JAX reference (keeps the PyTorch form, INCLUDING the hidden biases,
# to verify the bias-cancellation fusion is exact).
# -----------------------------------------------------------------------------
def reference_forward(x, params):
    def bn(x, g, b):
        m = jnp.mean(x, axis=0, keepdims=True)
        v = jnp.mean((x - m) ** 2, axis=0, keepdims=True)
        return (x - m) * jax.lax.rsqrt(v + BN_EPS) * g + b

    x = bn(x, *params["input_bn"])
    for (w, b, g, beta) in params["hidden"]:
        x = jnp.maximum(bn(x @ w + b, g, beta), 0.0)
    wo, bo = params["output"]
    return x @ wo + bo


if __name__ == "__main__":
    key = jax.random.PRNGKey(0)
    key, kx = jax.random.split(key)
    x = jax.random.normal(kx, (BATCH, INPUT_SIZE), jnp.float32)
    params = init_params(key)

    out = network_forward(x, params)
    out = jax.block_until_ready(out)

    ref = reference_forward(x, params)
    assert out.shape == (BATCH, OUTPUT_SIZE), out.shape
    assert jnp.allclose(out, ref, atol=1e-4, rtol=1e-4), (out, ref)

    print("KERNEL_OK")
</pallas_src>

<mosaic_0001>
module attributes {stable_mosaic.version = 11 : i64} {
  func.func @_mlp_kernel(%arg0: memref<8x128xf32, #tpu.memory_space<vmem>>, %arg1: memref<512x128xf32, #tpu.memory_space<vmem>>, %arg2: memref<16x128xf32, #tpu.memory_space<vmem>>, %arg3: memref<8x128xf32, #tpu.memory_space<vmem>>) attributes {dimension_semantics = [], scalar_prefetch = 0 : i64, scratch_operands = 0 : i64, tpu.core_type = #tpu.core_type<tc>} {
    %c0 = arith.constant 0 : index
    %c0_0 = arith.constant 0 : index
    %0 = vector.load %arg0[%c0, %c0_0] : memref<8x128xf32, #tpu.memory_space<vmem>>, vector<8x128xf32>
    %c0_1 = arith.constant 0 : index
    %c0_2 = arith.constant 0 : index
    %1 = vector.load %arg2[%c0_1, %c0_2] : memref<16x128xf32, #tpu.memory_space<vmem>>, vector<1x128xf32>
    %c1 = arith.constant 1 : index
    %c0_3 = arith.constant 0 : index
    %2 = vector.load %arg2[%c1, %c0_3] : memref<16x128xf32, #tpu.memory_space<vmem>>, vector<1x128xf32>
    %cst = arith.constant dense<0.000000e+00> : vector<128xf32>
    %3 = vector.multi_reduction <add>, %0, %cst [0] : vector<8x128xf32> to vector<128xf32>
    %4 = vector.shape_cast %3 : vector<128xf32> to vector<1x128xf32>
    %cst_4 = arith.constant 8.000000e+00 : f32
    %5 = vector.broadcast %cst_4 : f32 to vector<1x128xf32>
    %6 = arith.divf %4, %5 : vector<1x128xf32>
    %7 = vector.broadcast %6 : vector<1x128xf32> to vector<8x128xf32>
    %8 = arith.subf %0, %7 : vector<8x128xf32>
    %9 = arith.mulf %8, %8 : vector<8x128xf32>
    %cst_5 = arith.constant dense<0.000000e+00> : vector<128xf32>
    %10 = vector.multi_reduction <add>, %9, %cst_5 [0] : vector<8x128xf32> to vector<128xf32>
    %11 = vector.shape_cast %10 : vector<128xf32> to vector<1x128xf32>
    %cst_6 = arith.constant 8.000000e+00 : f32
    %12 = vector.broadcast %cst_6 : f32 to vector<1x128xf32>
    %13 = arith.divf %11, %12 : vector<1x128xf32>
    %cst_7 = arith.constant 9.99999974E-6 : f32
    %14 = vector.broadcast %cst_7 : f32 to vector<1x128xf32>
    %15 = arith.addf %13, %14 : vector<1x128xf32>
    %16 = math.rsqrt %15 : vector<1x128xf32>
    %17 = arith.mulf %16, %1 : vector<1x128xf32>
    %18 = arith.mulf %6, %17 : vector<1x128xf32>
    %19 = arith.subf %2, %18 : vector<1x128xf32>
    %20 = vector.broadcast %17 : vector<1x128xf32> to vector<8x128xf32>
    %21 = arith.mulf %0, %20 : vector<8x128xf32>
    %22 = vector.broadcast %19 : vector<1x128xf32> to vector<8x128xf32>
    %23 = arith.addf %21, %22 : vector<8x128xf32>
    %c0_8 = arith.constant 0 : index
    %c0_9 = arith.constant 0 : index
    %24 = vector.load %arg1[%c0_8, %c0_9] : memref<512x128xf32, #tpu.memory_space<vmem>>, vector<128x128xf32>
    %c2 = arith.constant 2 : index
    %c0_10 = arith.constant 0 : index
    %25 = vector.load %arg2[%c2, %c0_10] : memref<16x128xf32, #tpu.memory_space<vmem>>, vector<1x128xf32>
    %c3 = arith.constant 3 : index
    %c0_11 = arith.constant 0 : index
    %26 = vector.load %arg2[%c3, %c0_11] : memref<16x128xf32, #tpu.memory_space<vmem>>, vector<1x128xf32>
    %cst_12 = arith.constant dense<0.000000e+00> : vector<8x128xf32>
    %27 = tpu.matmul %23, %24, %cst_12 {dimension_numbers = #tpu.dot_dimension_numbers<[1], [0], [0], [1], [0, 0, 1, 1], [], []>} : vector<8x128xf32>, vector<128x128xf32>, vector<8x128xf32> -> vector<8x128xf32>
    %cst_13 = arith.constant dense<0.000000e+00> : vector<128xf32>
    %28 = vector.multi_reduction <add>, %27, %cst_13 [0] : vector<8x128xf32> to vector<128xf32>
    %29 = vector.shape_cast %28 : vector<128xf32> to vector<1x128xf32>
    %cst_14 = arith.constant 8.000000e+00 : f32
    %30 = vector.broadcast %cst_14 : f32 to vector<1x128xf32>
    %31 = arith.divf %29, %30 : vector<1x128xf32>
    %32 = vector.broadcast %31 : vector<1x128xf32> to vector<8x128xf32>
    %33 = arith.subf %27, %32 : vector<8x128xf32>
    %34 = arith.mulf %33, %33 : vector<8x128xf32>
    %cst_15 = arith.constant dense<0.000000e+00> : vector<128xf32>
    %35 = vector.multi_reduction <add>, %34, %cst_15 [0] : vector<8x128xf32> to vector<128xf32>
    %36 = vector.shape_cast %35 : vector<128xf32> to vector<1x128xf32>
    %cst_16 = arith.constant 8.000000e+00 : f32
    %37 = vector.broadcast %cst_16 : f32 to vector<1x128xf32>
    %38 = arith.divf %36, %37 : vector<1x128xf32>
    %cst_17 = arith.constant 9.99999974E-6 : f32
    %39 = vector.broadcast %cst_17 : f32 to vector<1x128xf32>
    %40 = arith.addf %38, %39 : vector<1x128xf32>
    %41 = math.rsqrt %40 : vector<1x128xf32>
    %42 = arith.mulf %41, %25 : vector<1x128xf32>
    %43 = arith.mulf %31, %42 : vector<1x128xf32>
    %44 = arith.subf %26, %43 : vector<1x128xf32>
    %45 = vector.broadcast %42 : vector<1x128xf32> to vector<8x128xf32>
    %46 = arith.mulf %27, %45 : vector<8x128xf32>
    %47 = vector.broadcast %44 : vector<1x128xf32> to vector<8x128xf32>
    %48 = arith.addf %46, %47 : vector<8x128xf32>
    %cst_18 = arith.constant 0.000000e+00 : f32
    %49 = vector.broadcast %cst_18 : f32 to vector<8x128xf32>
    %50 = arith.maximumf %48, %49 : vector<8x128xf32>
    %c128 = arith.constant 128 : index
    %c0_19 = arith.constant 0 : index
    %51 = vector.load %arg1[%c128, %c0_19] : memref<512x128xf32, #tpu.memory_space<vmem>>, vector<128x128xf32>
    %c4 = arith.constant 4 : index
    %c0_20 = arith.constant 0 : index
    %52 = vector.load %arg2[%c4, %c0_20] : memref<16x128xf32, #tpu.memory_space<vmem>>, vector<1x128xf32>
    %c5 = arith.constant 5 : index
    %c0_21 = arith.constant 0 : index
    %53 = vector.load %arg2[%c5, %c0_21] : memref<16x128xf32, #tpu.memory_space<vmem>>, vector<1x128xf32>
    %cst_22 = arith.constant dense<0.000000e+00> : vector<8x128xf32>
    %54 = tpu.matmul %50, %51, %cst_22 {dimension_numbers = #tpu.dot_dimension_numbers<[1], [0], [0], [1], [0, 0, 1, 1], [], []>} : vector<8x128xf32>, vector<128x128xf32>, vector<8x128xf32> -> vector<8x128xf32>
    %cst_23 = arith.constant dense<0.000000e+00> : vector<128xf32>
    %55 = vector.multi_reduction <add>, %54, %cst_23 [0] : vector<8x128xf32> to vector<128xf32>
    %56 = vector.shape_cast %55 : vector<128xf32> to vector<1x128xf32>
    %cst_24 = arith.constant 8.000000e+00 : f32
    %57 = vector.broadcast %cst_24 : f32 to vector<1x128xf32>
    %58 = arith.divf %56, %57 : vector<1x128xf32>
    %59 = vector.broadcast %58 : vector<1x128xf32> to vector<8x128xf32>
    %60 = arith.subf %54, %59 : vector<8x128xf32>
    %61 = arith.mulf %60, %60 : vector<8x128xf32>
    %cst_25 = arith.constant dense<0.000000e+00> : vector<128xf32>
    %62 = vector.multi_reduction <add>, %61, %cst_25 [0] : vector<8x128xf32> to vector<128xf32>
    %63 = vector.shape_cast %62 : vector<128xf32> to vector<1x128xf32>
    %cst_26 = arith.constant 8.000000e+00 : f32
    %64 = vector.broadcast %cst_26 : f32 to vector<1x128xf32>
    %65 = arith.divf %63, %64 : vector<1x128xf32>
    %cst_27 = arith.constant 9.99999974E-6 : f32
    %66 = vector.broadcast %cst_27 : f32 to vector<1x128xf32>
    %67 = arith.addf %65, %66 : vector<1x128xf32>
    %68 = math.rsqrt %67 : vector<1x128xf32>
    %69 = arith.mulf %68, %52 : vector<1x128xf32>
    %70 = arith.mulf %58, %69 : vector<1x128xf32>
    %71 = arith.subf %53, %70 : vector<1x128xf32>
    %72 = vector.broadcast %69 : vector<1x128xf32> to vector<8x128xf32>
    %73 = arith.mulf %54, %72 : vector<8x128xf32>
    %74 = vector.broadcast %71 : vector<1x128xf32> to vector<8x128xf32>
    %75 = arith.addf %73, %74 : vector<8x128xf32>
    %cst_28 = arith.constant 0.000000e+00 : f32
    %76 = vector.broadcast %cst_28 : f32 to vector<8x128xf32>
    %77 = arith.maximumf %75, %76 : vector<8x128xf32>
    %c256 = arith.constant 256 : index
    %c0_29 = arith.constant 0 : index
    %78 = vector.load %arg1[%c256, %c0_29] : memref<512x128xf32, #tpu.memory_space<vmem>>, vector<128x128xf32>
    %c6 = arith.constant 6 : index
    %c0_30 = arith.constant 0 : index
    %79 = vector.load %arg2[%c6, %c0_30] : memref<16x128xf32, #tpu.memory_space<vmem>>, vector<1x128xf32>
    %c7 = arith.constant 7 : index
    %c0_31 = arith.constant 0 : index
    %80 = vector.load %arg2[%c7, %c0_31] : memref<16x128xf32, #tpu.memory_space<vmem>>, vector<1x128xf32>
    %cst_32 = arith.constant dense<0.000000e+00> : vector<8x128xf32>
    %81 = tpu.matmul %77, %78, %cst_32 {dimension_numbers = #tpu.dot_dimension_numbers<[1], [0], [0], [1], [0, 0, 1, 1], [], []>} : vector<8x128xf32>, vector<128x128xf32>, vector<8x128xf32> -> vector<8x128xf32>
    %cst_33 = arith.constant dense<0.000000e+00> : vector<128xf32>
    %82 = vector.multi_reduction <add>, %81, %cst_33 [0] : vector<8x128xf32> to vector<128xf32>
    %83 = vector.shape_cast %82 : vector<128xf32> to vector<1x128xf32>
    %cst_34 = arith.constant 8.000000e+00 : f32
    %84 = vector.broadcast %cst_34 : f32 to vector<1x128xf32>
    %85 = arith.divf %83, %84 : vector<1x128xf32>
    %86 = vector.broadcast %85 : vector<1x128xf32> to vector<8x128xf32>
    %87 = arith.subf %81, %86 : vector<8x128xf32>
    %88 = arith.mulf %87, %87 : vector<8x128xf32>
    %cst_35 = arith.constant dense<0.000000e+00> : vector<128xf32>
    %89 = vector.multi_reduction <add>, %88, %cst_35 [0] : vector<8x128xf32> to vector<128xf32>
    %90 = vector.shape_cast %89 : vector<128xf32> to vector<1x128xf32>
    %cst_36 = arith.constant 8.000000e+00 : f32
    %91 = vector.broadcast %cst_36 : f32 to vector<1x128xf32>
    %92 = arith.divf %90, %91 : vector<1x128xf32>
    %cst_37 = arith.constant 9.99999974E-6 : f32
    %93 = vector.broadcast %cst_37 : f32 to vector<1x128xf32>
    %94 = arith.addf %92, %93 : vector<1x128xf32>
    %95 = math.rsqrt %94 : vector<1x128xf32>
    %96 = arith.mulf %95, %79 : vector<1x128xf32>
    %97 = arith.mulf %85, %96 : vector<1x128xf32>
    %98 = arith.subf %80, %97 : vector<1x128xf32>
    %99 = vector.broadcast %96 : vector<1x128xf32> to vector<8x128xf32>
    %100 = arith.mulf %81, %99 : vector<8x128xf32>
    %101 = vector.broadcast %98 : vector<1x128xf32> to vector<8x128xf32>
    %102 = arith.addf %100, %101 : vector<8x128xf32>
    %cst_38 = arith.constant 0.000000e+00 : f32
    %103 = vector.broadcast %cst_38 : f32 to vector<8x128xf32>
    %104 = arith.maximumf %102, %103 : vector<8x128xf32>
    %c384 = arith.constant 384 : index
    %c0_39 = arith.constant 0 : index
    %105 = vector.load %arg1[%c384, %c0_39] : memref<512x128xf32, #tpu.memory_space<vmem>>, vector<128x128xf32>
    %c8 = arith.constant 8 : index
    %c0_40 = arith.constant 0 : index
    %106 = vector.load %arg2[%c8, %c0_40] : memref<16x128xf32, #tpu.memory_space<vmem>>, vector<1x128xf32>
    %cst_41 = arith.constant dense<0.000000e+00> : vector<8x128xf32>
    %107 = tpu.matmul %104, %105, %cst_41 {dimension_numbers = #tpu.dot_dimension_numbers<[1], [0], [0], [1], [0, 0, 1, 1], [], []>} : vector<8x128xf32>, vector<128x128xf32>, vector<8x128xf32> -> vector<8x128xf32>
    %108 = vector.broadcast %106 : vector<1x128xf32> to vector<8x128xf32>
    %109 = arith.addf %107, %108 : vector<8x128xf32>
    %c0_42 = arith.constant 0 : index
    %c0_43 = arith.constant 0 : index
    %110 = vector.load %arg3[%c0_42, %c0_43] : memref<8x128xf32, #tpu.memory_space<vmem>>, vector<8x128xf32>
    tpu.vector_store %arg3[%c0_42, %c0_43], %109 {strides = array<i32>} : memref<8x128xf32, #tpu.memory_space<vmem>>, vector<8x128xf32>,
    return
  }
}

</mosaic_0001>

<bundles_post_ra>
// kernel: tpu_custom_call.1
= control target key start
LH: loop header
LB: loop body
LE: loop exit
PB: predicated region body
PF: predicated region fallthrough
CT: control target
= control target key end

     0   :  { %8 = vsyncpa [#allocation3], 0  ;;  %s573_s0 = inlined_call_operand.hbm [shape: f32[8,128], index: 0, kind: input, shape index: {}]   ;;  %s574_s1 = inlined_call_operand.hbm [shape: f32[512,128], index: 1, kind: input, shape index: {}]   ;;  %s575_s2 = inlined_call_operand.hbm [shape: f32[16,128], index: 2, kind: input, shape index: {}]   ;;  %s576_s3 = inlined_call_operand.hbm [shape: f32[8,128], index: 3, kind: output, shape index: {}]  }
   0x1   :  { %9 = vsyncpa [#allocation6], 0  ;;  %s26_s14 = sshll.u32 %s574_s1, 4  ;;  %s27_s14 = int_to_ptr.hbm [resolvable:$true] %s26_s14 }
   0x2   :  { %10 = vsyncpa [#allocation4], 0  ;;  %s500_s15 = smov [#allocation5]   ;;  %s16_s19 = sshll.u32 %s573_s0, 4  ;;  %s17_s19 = int_to_ptr.hbm [resolvable:$true] %s16_s19 }
   0x3   :  { %s28_s16 = sshll.u32 %s500_s15, 4  ;;  %s501_s20 = smov 128   ;;  %s29_s16 = int_to_ptr.vmem [resolvable:$true] %s28_s16 }
   0x4   :  { %s502_s21 = smov 8   ;;  %s503_s22 = smov [#allocation2]  }
   0x5   :  { %34 = dma.hbm_to_vmem [thread:$0]  %s27_s14, 8192, %s29_s16, [#allocation6], %s501_s20, %s501_s20, %s502_s21  }
   0x6   :  { %s18_s23 = sshll.u32 %s503_s22, 4  ;;  %s39_s26 = sshll.u32 %s575_s2, 4  ;;  %s19_s23 = int_to_ptr.vmem [resolvable:$true] %s18_s23  ;;  %s40_s26 = int_to_ptr.hbm [resolvable:$true] %s39_s26 }
   0x7   :  { %21 = dma.hbm_to_vmem [thread:$0]  %s17_s19, 128, %s19_s23, [#allocation3]  }
   0x8   :  { %s504_s1 = smov [#allocation7]  }
   0x9   :  { %s41_s27 = sshll.u32 %s504_s1, 4  ;;  %s42_s27 = int_to_ptr.vmem [resolvable:$true] %s41_s27 }
   0xa   :  { %47 = dma.hbm_to_vmem [thread:$0]  %s40_s26, 256, %s42_s27, [#allocation6], %s501_s20, %s501_s20, %s502_s21  }
   0xb   :  { %494 = dma.done.wait [#allocation3], 128  }
   0xc   :  { %495 = vsyncadd [#allocation3], 4294967168 }
   0xd   :  { %496 = dma.done.wait [#allocation6], 8448  }
   0xe   :  { %497 = vsyncadd [#allocation6], 4294958848  ;;  %v505_v0 = vmov 8.0   ;;  %v119_v2 = vld [vmem:[#allocation5 + $0x78] sm:$0xff]  ;;  %v118_v3 = vld [vmem:[#allocation5 + $0x70] sm:$0xff]  ;;  %s506_s0 = smov [#allocation8]  }
   0xf   :  { %388 = vrcp.f32 %v505_v0  ;;  %122 = vmatpush.msra.mxu0 %v119_v2  ;;  %v117_v5 = vld [vmem:[#allocation5 + $0x68] sm:$0xff]  ;;  %v116_v7 = vld [vmem:[#allocation5 + $0x60] sm:$0xff]  ;;  %v536_v8 = vld [vmem:[#allocation2] sm:$0xff]  ;;  %s367_s2 = sshll.u32 %s506_s0, 4  ;;  %s369_s30 = sshll.u32 %s576_s3, 4  ;;  %s368_s2 = int_to_ptr.vmem [resolvable:$true] %s367_s2  ;;  %s370_s30 = int_to_ptr.hbm [resolvable:$true] %s369_s30 }
  0x10   :  { %v115_v9 = vld [vmem:[#allocation5 + $0x58] sm:$0xff]  ;;  %v63_v10 = vrot.slane %v536_v8, 4  ;;  %v114_v12 = vld [vmem:[#allocation5 + $0x50] sm:$0xff]  ;;  %v113_v14 = vld [vmem:[#allocation5 + $0x48] sm:$0xff] }
  0x11   :  { %123 = vmatpush.msra.mxu0 %v118_v3  ;;  %v112_v17 = vld [vmem:[#allocation5 + $0x40] sm:$0xff]  ;;  %v111_v19 = vld [vmem:[#allocation5 + $0x38] sm:$0xff]  ;;  %v110_v22 = vld [vmem:[#allocation5 + $0x30] sm:$0xff] }
  0x12   :  { %v64_v13 = vadd.f32 %v63_v10, %v536_v8  ;;  %v109_v24 = vld [vmem:[#allocation5 + $0x28] sm:$0xff]  ;;  %v108_v26 = vld [vmem:[#allocation5 + $0x20] sm:$0xff]  ;;  %v107_v28 = vld [vmem:[#allocation5 + $0x18] sm:$0xff] }
  0x13   :  { %124 = vmatpush.msra.mxu0 %v117_v5  ;;  %v106_v30 = vld [vmem:[#allocation5 + $0x10] sm:$0xff]  ;;  %v105_v32 = vld [vmem:[#allocation5 + $0x8] sm:$0xff]  ;;  %v104_v34 = vld [vmem:[#allocation5] sm:$0xff] }
  0x14   :  { %v65_v15 = vrot.slane %v64_v13, 2  ;;  %v61_v46 = vld [vmem:[#allocation7] sm:$0x1]  ;;  %v62_v50 = vld [vmem:[#allocation7 + $0x1] sm:$0x1]  ;;  %v192_v59 = vld [vmem:[#allocation5 + $0xf8] sm:$0xff] }
  0x15   :  { %v389_v1 = vpop.eup %388  ;;  %125 = vmatpush.msra.mxu0 %v116_v7  ;;  %195 = vmatpush.msra.mxu1 %v192_v59  ;;  %v191_v61 = vld [vmem:[#allocation5 + $0xf0] sm:$0xff]  ;;  %v190_v63 = vld [vmem:[#allocation5 + $0xe8] sm:$0xff]  ;;  %v188_v3 = vld [vmem:[#allocation5 + $0xd8] sm:$0xff] }
  0x16   :  { %v70_v4 = vmul.f32 8.0, %v389_v1  ;;  %v66_v18 = vadd.f32 %v65_v15, %v64_v13  ;;  %vm74_vm0 = vweird.f32 %v389_v1  ;;  %v187_v5 = vld [vmem:[#allocation5 + $0xd0] sm:$0xff]  ;;  %v186_v7 = vld [vmem:[#allocation5 + $0xc8] sm:$0xff] }
  0x17   :  { %126 = vmatpush.msra.mxu0 %v115_v9  ;;  %196 = vmatpush.msra.mxu1 %v191_v61  ;;  %v185_v9 = vld [vmem:[#allocation5 + $0xc0] sm:$0xff]  ;;  %v183_v13 = vld [vmem:[#allocation5 + $0xb0] sm:$0xff]  ;;  %v182_v15 = vld [vmem:[#allocation5 + $0xa8] sm:$0xff] }
  0x18   :  { %v71_v6 = vsub.f32 1.0, %v70_v4  ;;  %v67_v20 = vrot.slane %v66_v18, 1  ;;  %v259_v59 = vld [vmem:[#allocation5 + $0x148] sm:$0xff]  ;;  %v258_v61 = vld [vmem:[#allocation5 + $0x140] sm:$0xff] }
  0x19   :  { %127 = vmatpush.msra.mxu0 %v114_v12  ;;  %197 = vmatpush.msra.mxu1 %v190_v63  ;;  %v257_v63 = vld [vmem:[#allocation5 + $0x138] sm:$0xff] }
  0x1a   :  { %v72_v11 = vmul.f32 %v389_v1, %v71_v6  ;;  %v68_v23 = vadd.f32 %v67_v20, %v66_v18  ;;  %v179_v20 = vld [vmem:[#allocation5 + $0x90] sm:$0xff] }
  0x1b   :  { %128 = vmatpush.msra.mxu0 %v113_v14 }
  0x1c   :  { %v73_v16 = vadd.f32 %v389_v1, %v72_v11  ;;  %v184_v11 = vld [vmem:[#allocation5 + $0xb8] sm:$0xff] }
  0x1d   :  { %129 = vmatpush.msra.mxu0 %v112_v17  ;;  %v181_v17 = vld [vmem:[#allocation5 + $0xa0] sm:$0xff] }
  0x1e   :  { %v540_v21 = vsel %vm74_vm0, %v389_v1, %v73_v16  ;;  %v189_v1 = vld [vmem:[#allocation5 + $0xe0] sm:$0xff] }
  0x1f   :  { %130 = vmatpush.msra.mxu0 %v111_v19  ;;  %v76_v25 = vmul.f32 %v540_v21, %v68_v23  ;;  %198 = vmatpush.msra.mxu1 %v189_v1  ;;  %v180_v19 = vld [vmem:[#allocation5 + $0x98] sm:$0xff]  ;;  %v178_v23 = vld [vmem:[#allocation5 + $0x88] sm:$0xff]  ;;  %v256_v1 = vld [vmem:[#allocation5 + $0x130] sm:$0xff] }
  0x21   :  { %131 = vmatpush.msra.mxu0 %v110_v22  ;;  %v77_v27 = vsub.f32 %v536_v8, %v76_v25  ;;  %199 = vmatpush.msra.mxu1 %v188_v3  ;;  %v255_v3 = vld [vmem:[#allocation5 + $0x128] sm:$0xff] }
  0x23   :  { %132 = vmatpush.msra.mxu0 %v109_v24  ;;  %v78_v29 = vmul.f32 %v77_v27, %v77_v27  ;;  %200 = vmatpush.msra.mxu1 %v187_v5  ;;  %v254_v5 = vld [vmem:[#allocation5 + $0x120] sm:$0xff] }
  0x25   :  { %133 = vmatpush.msra.mxu0 %v108_v26  ;;  %v79_v31 = vrot.slane %v78_v29, 4  ;;  %201 = vmatpush.msra.mxu1 %v186_v7  ;;  %v253_v7 = vld [vmem:[#allocation5 + $0x118] sm:$0xff] }
  0x27   :  { %134 = vmatpush.msra.mxu0 %v107_v28  ;;  %v80_v33 = vadd.f32 %v79_v31, %v78_v29  ;;  %202 = vmatpush.msra.mxu1 %v185_v9 }
  0x29   :  { %135 = vmatpush.msra.mxu0 %v106_v30  ;;  %v81_v35 = vrot.slane %v80_v33, 2  ;;  %203 = vmatpush.msra.mxu1 %v184_v11 }
  0x2b   :  { %136 = vmatpush.msra.mxu0 %v105_v32  ;;  %v82_v36 = vadd.f32 %v81_v35, %v80_v33  ;;  %204 = vmatpush.msra.mxu1 %v183_v13  ;;  %v120_v33 = vld [vmem:[#allocation7 + $0x2] sm:$0x1] }
  0x2d   :  { %137 = vmatpush.msra.mxu0 %v104_v34  ;;  %v83_v37 = vrot.slane %v82_v36, 1  ;;  %205 = vmatpush.msra.mxu1 %v182_v15 }
  0x2f   :  { %v84_v38 = vadd.f32 %v83_v37, %v82_v36  ;;  %206 = vmatpush.msra.mxu1 %v181_v17  ;;  %v121_v37 = vld [vmem:[#allocation7 + $0x3] sm:$0x1] }
  0x31   :  { %v85_v39 = vmul.f32 %v84_v38, %v540_v21  ;;  %207 = vmatpush.msra.mxu1 %v180_v19 }
  0x33   :  { %v86_v40 = vadd.f32 1e-05, %v85_v39  ;;  %208 = vmatpush.msra.mxu1 %v179_v20  ;;  %v193_v20 = vld [vmem:[#allocation7 + $0x4] sm:$0x1] }
  0x35   :  { %390 = vrsqrt.f32 %v86_v40  ;;  %vm93_vm1 = vweird.f32 %v86_v40  ;;  %209 = vmatpush.msra.mxu1 %v178_v23 }
  0x3b   :  { %v391_v41 = vpop.eup %390 }
  0x3c   :  { %v88_v42 = vmul.f32 %v391_v41, %v86_v40  ;;  %vm94_vm2 = vweird.f32 %v391_v41 }
  0x3d   :  { %vm95_vm3 = vmor %vm93_vm1, %vm94_vm2 }
  0x3e   :  { %v89_v43 = vmul.f32 %v391_v41, %v88_v42 }
  0x40   :  { %v90_v44 = vmul.f32 0.5, %v89_v43 }
  0x42   :  { %v91_v45 = vsub.f32 1.5, %v90_v44 }
  0x44   :  { %v92_v47 = vmul.f32 %v391_v41, %v91_v45 }
  0x46   :  { %v96_v48 = vsel %vm95_vm3, %v391_v41, %v92_v47  ;;  %v265_v47 = vld [vmem:[#allocation5 + $0x178] sm:$0xff] }
  0x47   :  { %v97_v49 = vmul.f32 %v96_v48, %v61_v46  ;;  %268 = vmatpush.msra.mxu2 %v265_v47  ;;  %v332_v47 = vld [vmem:[#allocation5 + $0x1c8] sm:$0xff] }
  0x49   :  { %v98_v51 = vmul.f32 %v97_v49, %v76_v25  ;;  %v100_v52 = vperm.slane %v97_v49, 0  ;;  %v177_v25 = vld [vmem:[#allocation5 + $0x80] sm:$0xff]  ;;  %v264_v49 = vld [vmem:[#allocation5 + $0x170] sm:$0xff] }
  0x4a   :  { %210 = vmatpush.msra.mxu1 %v177_v25  ;;  %269 = vmatpush.msra.mxu2 %v264_v49  ;;  %v194_v25 = vld [vmem:[#allocation7 + $0x5] sm:$0x1] }
  0x4b   :  { %v99_v53 = vsub.f32 %v62_v50, %v98_v51  ;;  %v101_v54 = vmul.f32 %v100_v52, %v536_v8  ;;  %v263_v51 = vld [vmem:[#allocation5 + $0x168] sm:$0xff]  ;;  %v331_v49 = vld [vmem:[#allocation5 + $0x1c0] sm:$0xff] }
  0x4c   :  { %270 = vmatpush.msra.mxu2 %v263_v51  ;;  %v330_v51 = vld [vmem:[#allocation5 + $0x1b8] sm:$0xff] }
  0x4d   :  { %v102_v55 = vperm.slane %v99_v53, 0  ;;  %v262_v53 = vld [vmem:[#allocation5 + $0x160] sm:$0xff] }
  0x4e   :  { %271 = vmatpush.msra.mxu2 %v262_v53  ;;  %v329_v53 = vld [vmem:[#allocation5 + $0x1b0] sm:$0xff] }
  0x4f   :  { %v103_v56 = vadd.f32 %v102_v55, %v101_v54  ;;  %v261_v55 = vld [vmem:[#allocation5 + $0x158] sm:$0xff] }
  0x50   :  { %272 = vmatpush.msra.mxu2 %v261_v55  ;;  %v328_v55 = vld [vmem:[#allocation5 + $0x1a8] sm:$0xff] }
  0x51   :  { %138 = vmatmul.f32.vlgmr.msra.gmra.mxu0 %v103_v56 }
  0xce   :  { %v546_v57 = vpop.f32.mrf.mxu0 }
  0xcf   :  { %v142_v58 = vrot.slane %v546_v57, 4 }
  0xd1   :  { %v143_v60 = vadd.f32 %v142_v58, %v546_v57 }
  0xd3   :  { %v144_v62 = vrot.slane %v143_v60, 2 }
  0xd5   :  { %v145_v0 = vadd.f32 %v144_v62, %v143_v60 }
  0xd7   :  { %v146_v2 = vrot.slane %v145_v0, 1 }
  0xd9   :  { %v147_v4 = vadd.f32 %v146_v2, %v145_v0 }
  0xdb   :  { %v148_v6 = vmul.f32 %v147_v4, %v540_v21 }
  0xdd   :  { %v149_v8 = vsub.f32 %v546_v57, %v148_v6 }
  0xdf   :  { %v150_v10 = vmul.f32 %v149_v8, %v149_v8  ;;  %v252_v8 = vld [vmem:[#allocation5 + $0x110] sm:$0xff] }
  0xe1   :  { %v151_v12 = vrot.slane %v150_v10, 4 }
  0xe3   :  { %v152_v14 = vadd.f32 %v151_v12, %v150_v10  ;;  %v251_v10 = vld [vmem:[#allocation5 + $0x108] sm:$0xff]  ;;  %v250_v12 = vld [vmem:[#allocation5 + $0x100] sm:$0xff] }
  0xe5   :  { %v153_v16 = vrot.slane %v152_v14, 2 }
  0xe7   :  { %v154_v18 = vadd.f32 %v153_v16, %v152_v14 }
  0xe9   :  { %v155_v22 = vrot.slane %v154_v18, 1 }
  0xeb   :  { %v156_v24 = vadd.f32 %v155_v22, %v154_v18 }
  0xed   :  { %v157_v26 = vmul.f32 %v156_v24, %v540_v21 }
  0xef   :  { %v158_v27 = vadd.f32 1e-05, %v157_v26 }
  0xf1   :  { %392 = vrsqrt.f32 %v158_v27  ;;  %vm165_vm5 = vweird.f32 %v158_v27 }
  0xf7   :  { %v393_v28 = vpop.eup %392 }
  0xf8   :  { %v160_v29 = vmul.f32 %v393_v28, %v158_v27  ;;  %vm166_vm4 = vweird.f32 %v393_v28 }
  0xf9   :  { %vm167_vm6 = vmor %vm165_vm5, %vm166_vm4 }
  0xfa   :  { %v161_v30 = vmul.f32 %v393_v28, %v160_v29 }
  0xfc   :  { %v162_v31 = vmul.f32 0.5, %v161_v30 }
  0xfe   :  { %v163_v32 = vsub.f32 1.5, %v162_v31 }
 0x100   :  { %v164_v34 = vmul.f32 %v393_v28, %v163_v32 }
 0x102   :  { %v168_v35 = vsel %vm167_vm6, %v393_v28, %v164_v34 }
 0x103   :  { %v169_v36 = vmul.f32 %v168_v35, %v120_v33  ;;  %v338_v35 = vld [vmem:[#allocation5 + $0x1f8] sm:$0xff] }
 0x104   :  { %341 = vmatpush.msra.mxu3 %v338_v35 }
 0x105   :  { %v172_v38 = vperm.slane %v169_v36, 0  ;;  %v170_v39 = vmul.f32 %v169_v36, %v148_v6 }
 0x107   :  { %v171_v40 = vsub.f32 %v121_v37, %v170_v39  ;;  %v173_v41 = vmul.f32 %v172_v38, %v546_v57  ;;  %v260_v57 = vld [vmem:[#allocation5 + $0x150] sm:$0xff]  ;;  %v336_v39 = vld [vmem:[#allocation5 + $0x1e8] sm:$0xff] }
 0x108   :  { %273 = vmatpush.msra.mxu2 %v260_v57  ;;  %v337_v37 = vld [vmem:[#allocation5 + $0x1f0] sm:$0xff]  ;;  %v327_v57 = vld [vmem:[#allocation5 + $0x1a0] sm:$0xff] }
 0x109   :  { %v174_v42 = vperm.slane %v171_v40, 0  ;;  %342 = vmatpush.msra.mxu3 %v337_v37 }
 0x10a   :  { %274 = vmatpush.msra.mxu2 %v259_v59  ;;  %v326_v59 = vld [vmem:[#allocation5 + $0x198] sm:$0xff] }
 0x10b   :  { %v175_v43 = vadd.f32 %v174_v42, %v173_v41  ;;  %343 = vmatpush.msra.mxu3 %v336_v39  ;;  %v335_v41 = vld [vmem:[#allocation5 + $0x1e0] sm:$0xff] }
 0x10c   :  { %275 = vmatpush.msra.mxu2 %v258_v61 }
 0x10d   :  { %v176_v44 = vmax.f32 %v175_v43, 0.0  ;;  %344 = vmatpush.msra.mxu3 %v335_v41  ;;  %v334_v43 = vld [vmem:[#allocation5 + $0x1d8] sm:$0xff] }
 0x10e   :  { %276 = vmatpush.msra.mxu2 %v257_v63 }
 0x10f   :  { %211 = vmatmul.f32.vlgmr.msra.gmra.mxu1 %v176_v44  ;;  %345 = vmatpush.msra.mxu3 %v334_v43 }
 0x110   :  { %277 = vmatpush.msra.mxu2 %v256_v1 }
 0x112   :  { %278 = vmatpush.msra.mxu2 %v255_v3 }
 0x114   :  { %279 = vmatpush.msra.mxu2 %v254_v5 }
 0x116   :  { %280 = vmatpush.msra.mxu2 %v253_v7 }
 0x118   :  { %281 = vmatpush.msra.mxu2 %v252_v8  ;;  %v266_v8 = vld [vmem:[#allocation7 + $0x6] sm:$0x1] }
 0x11a   :  { %282 = vmatpush.msra.mxu2 %v251_v10 }
 0x11c   :  { %283 = vmatpush.msra.mxu2 %v250_v12  ;;  %v267_v12 = vld [vmem:[#allocation7 + $0x7] sm:$0x1] }
 0x18c   :  { %v554_v45 = vpop.f32.mrf.mxu1 }
 0x18d   :  { %v215_v46 = vrot.slane %v554_v45, 4 }
 0x18f   :  { %v216_v48 = vadd.f32 %v215_v46, %v554_v45 }
 0x191   :  { %v217_v50 = vrot.slane %v216_v48, 2 }
 0x193   :  { %v218_v52 = vadd.f32 %v217_v50, %v216_v48 }
 0x195   :  { %v219_v54 = vrot.slane %v218_v52, 1 }
 0x197   :  { %v220_v56 = vadd.f32 %v219_v54, %v218_v52 }
 0x199   :  { %v221_v58 = vmul.f32 %v220_v56, %v540_v21 }
 0x19b   :  { %v222_v60 = vsub.f32 %v554_v45, %v221_v58 }
 0x19d   :  { %v223_v62 = vmul.f32 %v222_v60, %v222_v60  ;;  %v325_v60 = vld [vmem:[#allocation5 + $0x190] sm:$0xff] }
 0x19f   :  { %v224_v0 = vrot.slane %v223_v62, 4 }
 0x1a1   :  { %v225_v2 = vadd.f32 %v224_v0, %v223_v62  ;;  %v324_v62 = vld [vmem:[#allocation5 + $0x188] sm:$0xff]  ;;  %v323_v0 = vld [vmem:[#allocation5 + $0x180] sm:$0xff] }
 0x1a3   :  { %v226_v4 = vrot.slane %v225_v2, 2 }
 0x1a5   :  { %v227_v6 = vadd.f32 %v226_v4, %v225_v2 }
 0x1a7   :  { %v228_v9 = vrot.slane %v227_v6, 1 }
 0x1a9   :  { %v229_v11 = vadd.f32 %v228_v9, %v227_v6 }
 0x1ab   :  { %v230_v13 = vmul.f32 %v229_v11, %v540_v21 }
 0x1ad   :  { %v231_v14 = vadd.f32 1e-05, %v230_v13 }
 0x1af   :  { %394 = vrsqrt.f32 %v231_v14  ;;  %vm238_vm8 = vweird.f32 %v231_v14 }
 0x1b5   :  { %v395_v15 = vpop.eup %394 }
 0x1b6   :  { %v233_v16 = vmul.f32 %v395_v15, %v231_v14  ;;  %vm239_vm7 = vweird.f32 %v395_v15 }
 0x1b7   :  { %vm240_vm9 = vmor %vm238_vm8, %vm239_vm7 }
 0x1b8   :  { %v234_v17 = vmul.f32 %v395_v15, %v233_v16 }
 0x1ba   :  { %v235_v18 = vmul.f32 0.5, %v234_v17 }
 0x1bc   :  { %v236_v19 = vsub.f32 1.5, %v235_v18 }
 0x1be   :  { %v237_v22 = vmul.f32 %v395_v15, %v236_v19  ;;  %v387_v19 = vld [vmem:[#allocation7 + $0x8] ss:$0 sm:$0xff] }
 0x1c0   :  { %v241_v23 = vsel %vm240_vm9, %v395_v15, %v237_v22 }
 0x1c1   :  { %v242_v24 = vmul.f32 %v241_v23, %v193_v20 }
 0x1c3   :  { %v245_v26 = vperm.slane %v242_v24, 0  ;;  %v243_v27 = vmul.f32 %v242_v24, %v221_v58 }
 0x1c5   :  { %v244_v28 = vsub.f32 %v194_v25, %v243_v27  ;;  %v246_v29 = vmul.f32 %v245_v26, %v554_v45  ;;  %v333_v45 = vld [vmem:[#allocation5 + $0x1d0] sm:$0xff] }
 0x1c6   :  { %346 = vmatpush.msra.mxu3 %v333_v45 }
 0x1c7   :  { %v247_v30 = vperm.slane %v244_v28, 0 }
 0x1c8   :  { %347 = vmatpush.msra.mxu3 %v332_v47 }
 0x1c9   :  { %v248_v31 = vadd.f32 %v247_v30, %v246_v29 }
 0x1ca   :  { %348 = vmatpush.msra.mxu3 %v331_v49 }
 0x1cb   :  { %v249_v32 = vmax.f32 %v248_v31, 0.0 }
 0x1cc   :  { %349 = vmatpush.msra.mxu3 %v330_v51 }
 0x1cd   :  { %284 = vmatmul.f32.vlgmr.msra.gmra.mxu2 %v249_v32 }
 0x1ce   :  { %350 = vmatpush.msra.mxu3 %v329_v53 }
 0x1d0   :  { %351 = vmatpush.msra.mxu3 %v328_v55 }
 0x1d2   :  { %352 = vmatpush.msra.mxu3 %v327_v57 }
 0x1d4   :  { %353 = vmatpush.msra.mxu3 %v326_v59 }
 0x1d6   :  { %354 = vmatpush.msra.mxu3 %v325_v60 }
 0x1d8   :  { %355 = vmatpush.msra.mxu3 %v324_v62 }
 0x1da   :  { %356 = vmatpush.msra.mxu3 %v323_v0 }
 0x250   :  { %v562_v33 = vpop.f32.mrf.mxu2 }
 0x251   :  { %v288_v34 = vrot.slane %v562_v33, 4 }
 0x253   :  { %v289_v36 = vadd.f32 %v288_v34, %v562_v33 }
 0x255   :  { %v290_v38 = vrot.slane %v289_v36, 2 }
 0x257   :  { %v291_v40 = vadd.f32 %v290_v38, %v289_v36 }
 0x259   :  { %v292_v42 = vrot.slane %v291_v40, 1 }
 0x25b   :  { %v293_v44 = vadd.f32 %v292_v42, %v291_v40 }
 0x25d   :  { %v294_v46 = vmul.f32 %v293_v44, %v540_v21 }
 0x25f   :  { %v295_v48 = vsub.f32 %v562_v33, %v294_v46 }
 0x261   :  { %v296_v50 = vmul.f32 %v295_v48, %v295_v48 }
 0x263   :  { %v297_v52 = vrot.slane %v296_v50, 4 }
 0x265   :  { %v298_v54 = vadd.f32 %v297_v52, %v296_v50 }
 0x267   :  { %v299_v56 = vrot.slane %v298_v54, 2 }
 0x269   :  { %v300_v58 = vadd.f32 %v299_v56, %v298_v54 }
 0x26b   :  { %v301_v61 = vrot.slane %v300_v58, 1 }
 0x26d   :  { %v302_v63 = vadd.f32 %v301_v61, %v300_v58 }
 0x26f   :  { %v303_v1 = vmul.f32 %v302_v63, %v540_v21 }
 0x271   :  { %v304_v2 = vadd.f32 1e-05, %v303_v1 }
 0x273   :  { %396 = vrsqrt.f32 %v304_v2  ;;  %vm311_vm11 = vweird.f32 %v304_v2 }
 0x279   :  { %v397_v3 = vpop.eup %396 }
 0x27a   :  { %v306_v4 = vmul.f32 %v397_v3, %v304_v2  ;;  %vm312_vm10 = vweird.f32 %v397_v3 }
 0x27b   :  { %vm313_vm12 = vmor %vm311_vm11, %vm312_vm10 }
 0x27c   :  { %v307_v5 = vmul.f32 %v397_v3, %v306_v4 }
 0x27e   :  { %v308_v6 = vmul.f32 0.5, %v307_v5 }
 0x280   :  { %v309_v7 = vsub.f32 1.5, %v308_v6 }
 0x282   :  { %v310_v9 = vmul.f32 %v397_v3, %v309_v7 }
 0x284   :  { %v314_v10 = vsel %vm313_vm12, %v397_v3, %v310_v9 }
 0x285   :  { %v315_v11 = vmul.f32 %v314_v10, %v266_v8 }
 0x287   :  { %v318_v13 = vperm.slane %v315_v11, 0  ;;  %v316_v14 = vmul.f32 %v315_v11, %v294_v46 }
 0x289   :  { %v317_v15 = vsub.f32 %v267_v12, %v316_v14  ;;  %v319_v21 = vmul.f32 %v318_v13, %v562_v33 }
 0x28b   :  { %v320_v16 = vperm.slane %v317_v15, 0 }
 0x28d   :  { %v321_v17 = vadd.f32 %v320_v16, %v319_v21 }
 0x28f   :  { %v322_v18 = vmax.f32 %v321_v17, 0.0 }
 0x291   :  { %357 = vmatmul.f32.vlgmr.msra.gmra.mxu3 %v322_v18 }
 0x314   :  { %v358_v20 = vpop.f32.mrf.mxu3 }
 0x315   :  { %v359_v22 = vadd.f32 %v387_v19, %v358_v20 }
 0x317   :  { %361 = vst [vmem:[#allocation8] sm:$0xff] %v359_v22 }
 0x318   :  { %372 = dma.vmem_to_hbm [thread:$0]  %s368_s2, 128, %s370_s30, [#allocation4]  }
 0x319   :  { %498 = dma.done.wait [#allocation4], 128  }
 0x31a   :  { %499 = vsyncadd [#allocation4], 4294967168 }
 0x31b   :  { %377 = vsyncpa [#allocation3], 1 }
 0x31c   :  { %378 = vsyncpa [#allocation6], 1 }
 0x31d   :  { %379 = vsyncpa [#allocation4], 1 }

</bundles_post_ra>
